<compile_context>
chip_gen: v7x
topology: tpu7x:2x2x1
jax: 0.10.0
libtpu: 0.0.40
codegen_flags: <defaults>
</compile_context>

<pallas_src>
import functools

import jax
import jax.numpy as jnp
from jax.experimental import pallas as pl
from jax.experimental.pallas import tpu as pltpu


def _cdiv(a, b):
    return -(-a // b)


def _round_up(a, b):
    return _cdiv(a, b) * b


# ---------------------------------------------------------------------------
# element-wise focal loss body (float32), EUP-lean
# ---------------------------------------------------------------------------
def _focal_loss_body(x, y, alpha, gamma):
    """Elementwise sigmoid focal loss; matches the PyTorch module math."""
    e = jnp.exp(-jnp.abs(x))                      # shared transcendental
    r = pl.reciprocal(1.0 + e, approx=True)       # 1/(1+e) on the EUP path
    p = jnp.where(x >= 0.0, r, 1.0 - r)           # sigmoid(x)
    # p_t = p*y + (1-p)*(1-y); alpha_t = a*y + (1-a)*(1-y)  (exact algebra)
    pt = 1.0 - p - y + 2.0 * p * y
    at = (1.0 - alpha) + (2.0 * alpha - 1.0) * y
    # numerically stable binary_cross_entropy_with_logits, reduction='none'
    bce = jnp.maximum(x, 0.0) - x * y + jnp.log1p(e)

    one_minus_pt = 1.0 - pt
    g = float(gamma)
    gi = int(g)
    if g == gi and 0 <= gi <= 8:                  # integer gamma: VPU multiplies
        if gi == 0:
            focal = jnp.ones_like(one_minus_pt)
        else:
            focal = one_minus_pt
            for _ in range(gi - 1):
                focal = focal * one_minus_pt
    else:                                         # generic gamma: keep pow
        focal = jnp.power(one_minus_pt, g)
    return at * focal * bce


# ---------------------------------------------------------------------------
# kernels: grid = (row tiles, K tiles); K axis accumulated in VMEM scratch
# ---------------------------------------------------------------------------
def _focal_masked_kernel(logits_ref, labels_ref, mask_ref, out_ref,
                         num_sc, den_sc, *, alpha, gamma, tile_k, k_total):
    k = pl.program_id(1)

    @pl.when(k == 0)
    def _():
        num_sc[...] = jnp.zeros_like(num_sc)
        den_sc[...] = jnp.zeros_like(den_sc)

    x = logits_ref[...].astype(jnp.float32)
    y = labels_ref[...].astype(jnp.float32)
    m = mask_ref[...].astype(jnp.float32)
    loss_m = _focal_loss_body(x, y, alpha, gamma) * m
    if k_total % tile_k != 0:                      # ragged K: mask padded lanes
        col = jax.lax.broadcasted_iota(jnp.int32, x.shape, 1) + k * tile_k
        valid = col < k_total
        loss_m = jnp.where(valid, loss_m, 0.0)
        m = jnp.where(valid, m, 0.0)
    num_sc[...] += jnp.sum(loss_m, axis=-1, keepdims=True)
    den_sc[...] += jnp.sum(m, axis=-1, keepdims=True)

    @pl.when(k == pl.num_programs(1) - 1)
    def _():
        # exact divide: runs once per row tile, removes approx-recip error
        out_ref[...] = num_sc[...] / (den_sc[...] + 1e-8)


def _focal_mean_kernel(logits_ref, labels_ref, out_ref, acc_sc,
                       *, alpha, gamma, tile_k, k_total, inv_k):
    k = pl.program_id(1)

    @pl.when(k == 0)
    def _():
        acc_sc[...] = jnp.zeros_like(acc_sc)

    x = logits_ref[...].astype(jnp.float32)
    y = labels_ref[...].astype(jnp.float32)
    loss = _focal_loss_body(x, y, alpha, gamma)
    if k_total % tile_k != 0:                      # ragged K: mask padded lanes
        col = jax.lax.broadcasted_iota(jnp.int32, x.shape, 1) + k * tile_k
        valid = col < k_total
        loss = jnp.where(valid, loss, 0.0)
    acc_sc[...] += jnp.sum(loss, axis=-1, keepdims=True)

    @pl.when(k == pl.num_programs(1) - 1)
    def _():
        out_ref[...] = acc_sc[...] * inv_k         # mean = sum * (1/true K)


# ---------------------------------------------------------------------------
# generation-aware VMEM sizing
# ---------------------------------------------------------------------------
_FALLBACK_INPUT_BUDGET = 8 * 1024 * 1024
_FALLBACK_VMEM_LIMIT = 32 * 1024 * 1024
_FALLBACK_TILE_M_CAP = 1024


def _vmem_config():
    """(input_budget_bytes, vmem_limit_bytes, tile_m_cap), per TPU generation."""
    try:
        info = pltpu.get_tpu_info()
        vmem = getattr(info, "vmem_capacity_bytes", None)
    except Exception:
        vmem = None
    if vmem is None:
        return _FALLBACK_INPUT_BUDGET, _FALLBACK_VMEM_LIMIT, _FALLBACK_TILE_M_CAP
    if vmem >= 100 * 1024 * 1024:
        # v5e / v6e: 128 MiB physical -> bigger tiles to amortize grid overhead
        return 24 * 1024 * 1024, 64 * 1024 * 1024, 2048
    # v7x: 64 MiB per TC -> bounded budget, keep double-buffering headroom
    return 14 * 1024 * 1024, 40 * 1024 * 1024, 1024


def _pick_tiles(M, K, itemsizes, tile_m, tile_k, input_budget, tile_m_cap):
    # sublane granularity per packing: f32 -> 8, bf16 -> 16, int8 -> 32
    min_isz = min(itemsizes)
    sub = 8 if min_isz >= 4 else (16 if min_isz == 2 else 32)

    if tile_k is None:
        tile_k = K if K <= 2048 else 2048
    if tile_k >= K:
        tile_k = K                                 # full-K block (== array dim)
    else:
        tile_k = max(128, (tile_k // 128) * 128)   # lane-aligned K tile

    if tile_m is None:
        bytes_per_row = 2 * tile_k * sum(itemsizes)   # x2 = double buffering
        t = input_budget // max(bytes_per_row, 1)
        t = max(sub, min(tile_m_cap, (t // sub) * sub))
        if t >= M:
            # one tile covers all rows; split in two balanced tiles when large
            # enough so the "parallel" axis can shard across both TensorCores.
            if M >= 2 * sub:
                t = max(sub, _round_up(_cdiv(M, 2), sub))
                if t >= M:
                    t = M
            else:
                t = M
        elif _cdiv(M, t) == 2:
            # balance the 2-way split (avoid e.g. 1024 + 8 rows on dual-TC)
            t = min(t, max(sub, _round_up(_cdiv(M, 2), sub)))
        tile_m = t
    return tile_m, tile_k


# ---------------------------------------------------------------------------
# wrapper
# ---------------------------------------------------------------------------
def focal_loss(logits, labels, mask=None, *, alpha, gamma,
               tile_m=None, tile_k=None):
    """Pallas implementation of FocalLoss.forward with reduce_dim = -1.

    logits: (M, K) float. labels (and mask): (M, K) 0/1 arrays; int8 or bf16
    preferred (upcast in-kernel) to cut HBM bytes.  Returns float32 (M,).
    """
    M, K = logits.shape
    assert labels.shape == (M, K)
    operands = [logits, labels] + ([mask] if mask is not None else [])
    itemsizes = [jnp.dtype(o.dtype).itemsize for o in operands]

    input_budget, vmem_limit, tile_m_cap = _vmem_config()
    tile_m, tile_k = _pick_tiles(M, K, itemsizes, tile_m, tile_k,
                                 input_budget, tile_m_cap)
    grid_m = _cdiv(M, tile_m)     # ragged last row tile handled by Pallas
    grid_k = _cdiv(K, tile_k)     # ragged last K tile handled by lane mask

    in_spec = pl.BlockSpec((tile_m, tile_k), lambda i, k: (i, k))
    out_spec = pl.BlockSpec((tile_m, 1), lambda i, k: (i, 0))
    cparams = pltpu.CompilerParams(
        dimension_semantics=("parallel", "arbitrary"),
        vmem_limit_bytes=vmem_limit)

    if mask is not None:
        kernel = functools.partial(_focal_masked_kernel,
                                   alpha=float(alpha), gamma=float(gamma),
                                   tile_k=tile_k, k_total=K)
        scratch = [pltpu.VMEM((tile_m, 1), jnp.float32),
                   pltpu.VMEM((tile_m, 1), jnp.float32)]
    else:
        kernel = functools.partial(_focal_mean_kernel,
                                   alpha=float(alpha), gamma=float(gamma),
                                   tile_k=tile_k, k_total=K,
                                   inv_k=1.0 / float(K))
        scratch = [pltpu.VMEM((tile_m, 1), jnp.float32)]

    out = pl.pallas_call(
        kernel,
        out_shape=jax.ShapeDtypeStruct((M, 1), jnp.float32),
        grid_spec=pltpu.PrefetchScalarGridSpec(
            num_scalar_prefetch=0,
            grid=(grid_m, grid_k),
            in_specs=[in_spec] * len(operands),
            out_specs=out_spec,
            scratch_shapes=scratch),
        compiler_params=cparams,
    )(*operands)

    # TODO(synk): a lane-dense (1, tile_m) output layout would avoid masked
    # vst.msk stores; skipped since output traffic is negligible vs inputs.
    return out[:, 0]


# ---------------------------------------------------------------------------
# pure-JAX reference mirroring the PyTorch module (for sanity check)
# ---------------------------------------------------------------------------
def _reference(logits, labels, mask, alpha, gamma):
    x = logits.astype(jnp.float32)
    y = labels.astype(jnp.float32)
    p = jax.nn.sigmoid(x)
    pt = p * y + (1.0 - p) * (1.0 - y)
    at = alpha * y + (1.0 - alpha) * (1.0 - y)
    bce = jnp.maximum(x, 0.0) - x * y + jnp.log1p(jnp.exp(-jnp.abs(x)))
    loss = at * (1.0 - pt) ** gamma * bce
    if mask is not None:
        m = mask.astype(jnp.float32)
        return (loss * m).sum(-1) / (m.sum(-1) + 1e-8)
    return loss.mean(-1)


if __name__ == "__main__":
    key = jax.random.PRNGKey(0)
    k1, k2, k3, k4, k5, k6 = jax.random.split(key, 6)
    alpha, gamma = 0.25, 2.0

    # --- test 1: small shape, ragged-M single-tile path, full-K block -------
    M, K = 20, 256
    logits = jax.random.normal(k1, (M, K), dtype=jnp.float32)
    labels = (jax.random.uniform(k2, (M, K)) > 0.5).astype(jnp.int8)
    mask = (jax.random.uniform(k3, (M, K)) > 0.3).astype(jnp.int8)

    out_masked = jax.block_until_ready(
        focal_loss(logits, labels, mask, alpha=alpha, gamma=gamma))
    ref_masked = _reference(logits, labels, mask, alpha, gamma)
    out_mean = jax.block_until_ready(
        focal_loss(logits, labels, None, alpha=alpha, gamma=gamma))
    ref_mean = _reference(logits, labels, None, alpha, gamma)

    assert out_masked.shape == (M,) and out_mean.shape == (M,)
    assert jnp.allclose(out_masked, ref_masked, atol=2e-3, rtol=2e-3)
    assert jnp.allclose(out_mean, ref_mean, atol=2e-3, rtol=2e-3)

    # --- test 2: K-tiled path with ragged K (lane-masked last K tile) -------
    M2, K2 = 32, 1000
    logits2 = jax.random.normal(k4, (M2, K2), dtype=jnp.float32)
    labels2 = (jax.random.uniform(k5, (M2, K2)) > 0.5).astype(jnp.int8)
    mask2 = (jax.random.uniform(k6, (M2, K2)) > 0.3).astype(jnp.int8)

    out2 = jax.block_until_ready(
        focal_loss(logits2, labels2, mask2, alpha=alpha, gamma=gamma,
                   tile_k=256))
    ref2 = _reference(logits2, labels2, mask2, alpha, gamma)
    out2_mean = jax.block_until_ready(
        focal_loss(logits2, labels2, None, alpha=alpha, gamma=gamma,
                   tile_k=256))
    ref2_mean = _reference(logits2, labels2, None, alpha, gamma)

    assert jnp.allclose(out2, ref2, atol=2e-3, rtol=2e-3)
    assert jnp.allclose(out2_mean, ref2_mean, atol=2e-3, rtol=2e-3)

    print("KERNEL_OK")
</pallas_src>

<mosaic_0001>
module attributes {stable_mosaic.version = 11 : i64} {
  func.func @_focal_masked_kernel(%arg0: i32, %arg1: i32, %arg2: memref<20x256xf32, #tpu.memory_space<vmem>>, %arg3: memref<20x256xi8, #tpu.memory_space<vmem>>, %arg4: memref<20x256xi8, #tpu.memory_space<vmem>>, %arg5: memref<20x1xf32, #tpu.memory_space<vmem>>, %arg6: memref<20x1xf32, #tpu.memory_space<vmem>>, %arg7: memref<20x1xf32, #tpu.memory_space<vmem>>) attributes {dimension_semantics = [#tpu.dimension_semantics<parallel>, #tpu.dimension_semantics<arbitrary>], iteration_bounds = array<i64: 1, 1>, scalar_prefetch = 0 : i64, scratch_operands = 2 : i64, tpu.core_type = #tpu.core_type<tc>, window_params = [{transform_indices = @transform_0, window_bounds = array<i64: 20, 256>}, {transform_indices = @transform_1, window_bounds = array<i64: 20, 256>}, {transform_indices = @transform_2, window_bounds = array<i64: 20, 256>}, {transform_indices = @transform_3, window_bounds = array<i64: 20, 1>}]} {
    %c0_i32 = arith.constant 0 : i32
    %0 = arith.cmpi eq, %arg1, %c0_i32 : i32
    %1 = arith.extui %0 : i1 to i32
    %c0_i32_0 = arith.constant 0 : i32
    %2 = arith.cmpi ne, %1, %c0_i32_0 : i32
    scf.if %2 {
      %cst_27 = arith.constant 0.000000e+00 : f32
      %56 = vector.broadcast %cst_27 : f32 to vector<20x1xf32>
      %c0_28 = arith.constant 0 : index
      %c0_29 = arith.constant 0 : index
      %57 = vector.load %arg6[%c0_28, %c0_29] : memref<20x1xf32, #tpu.memory_space<vmem>>, vector<20x1xf32>
      tpu.vector_store %arg6[%c0_28, %c0_29], %56 {strides = array<i32>} : memref<20x1xf32, #tpu.memory_space<vmem>>, vector<20x1xf32>,
      %cst_30 = arith.constant 0.000000e+00 : f32
      %58 = vector.broadcast %cst_30 : f32 to vector<20x1xf32>
      %c0_31 = arith.constant 0 : index
      %c0_32 = arith.constant 0 : index
      %59 = vector.load %arg7[%c0_31, %c0_32] : memref<20x1xf32, #tpu.memory_space<vmem>>, vector<20x1xf32>
      tpu.vector_store %arg7[%c0_31, %c0_32], %58 {strides = array<i32>} : memref<20x1xf32, #tpu.memory_space<vmem>>, vector<20x1xf32>,
    } else {
    }
    %c0 = arith.constant 0 : index
    %c0_1 = arith.constant 0 : index
    %3 = vector.load %arg2[%c0, %c0_1] : memref<20x256xf32, #tpu.memory_space<vmem>>, vector<20x256xf32>
    %c0_2 = arith.constant 0 : index
    %c0_3 = arith.constant 0 : index
    %4 = vector.load %arg3[%c0_2, %c0_3] : memref<20x256xi8, #tpu.memory_space<vmem>>, vector<20x256xi8>
    %5 = arith.sitofp %4 : vector<20x256xi8> to vector<20x256xf32>
    %c0_4 = arith.constant 0 : index
    %c0_5 = arith.constant 0 : index
    %6 = vector.load %arg4[%c0_4, %c0_5] : memref<20x256xi8, #tpu.memory_space<vmem>>, vector<20x256xi8>
    %7 = arith.sitofp %6 : vector<20x256xi8> to vector<20x256xf32>
    %8 = math.absf %3 : vector<20x256xf32>
    %cst = arith.constant 0.000000e+00 : f32
    %9 = vector.broadcast %cst : f32 to vector<20x256xf32>
    %10 = arith.subf %9, %8 : vector<20x256xf32>
    %11 = math.exp %10 : vector<20x256xf32>
    %cst_6 = arith.constant 1.000000e+00 : f32
    %12 = vector.broadcast %cst_6 : f32 to vector<20x256xf32>
    %13 = arith.addf %12, %11 : vector<20x256xf32>
    %14 = tpu.reciprocal %13 {approx = true} : vector<20x256xf32> -> vector<20x256xf32>
    %cst_7 = arith.constant 0.000000e+00 : f32
    %15 = vector.broadcast %cst_7 : f32 to vector<20x256xf32>
    %16 = arith.cmpf oge, %3, %15 : vector<20x256xf32>
    %cst_8 = arith.constant 1.000000e+00 : f32
    %17 = vector.broadcast %cst_8 : f32 to vector<20x256xf32>
    %18 = arith.subf %17, %14 : vector<20x256xf32>
    %19 = arith.select %16, %14, %18 : vector<20x256xi1>, vector<20x256xf32>
    %cst_9 = arith.constant 1.000000e+00 : f32
    %20 = vector.broadcast %cst_9 : f32 to vector<20x256xf32>
    %21 = arith.subf %20, %19 : vector<20x256xf32>
    %22 = arith.subf %21, %5 : vector<20x256xf32>
    %cst_10 = arith.constant 2.000000e+00 : f32
    %23 = vector.broadcast %cst_10 : f32 to vector<20x256xf32>
    %24 = arith.mulf %23, %19 : vector<20x256xf32>
    %25 = arith.mulf %24, %5 : vector<20x256xf32>
    %26 = arith.addf %22, %25 : vector<20x256xf32>
    %cst_11 = arith.constant -5.000000e-01 : f32
    %27 = vector.broadcast %cst_11 : f32 to vector<20x256xf32>
    %28 = arith.mulf %27, %5 : vector<20x256xf32>
    %cst_12 = arith.constant 7.500000e-01 : f32
    %29 = vector.broadcast %cst_12 : f32 to vector<20x256xf32>
    %30 = arith.addf %29, %28 : vector<20x256xf32>
    %cst_13 = arith.constant 0.000000e+00 : f32
    %31 = vector.broadcast %cst_13 : f32 to vector<20x256xf32>
    %32 = arith.maximumf %3, %31 : vector<20x256xf32>
    %33 = arith.mulf %3, %5 : vector<20x256xf32>
    %34 = arith.subf %32, %33 : vector<20x256xf32>
    %35 = math.log1p %11 : vector<20x256xf32>
    %36 = arith.addf %34, %35 : vector<20x256xf32>
    %cst_14 = arith.constant 1.000000e+00 : f32
    %37 = vector.broadcast %cst_14 : f32 to vector<20x256xf32>
    %38 = arith.subf %37, %26 : vector<20x256xf32>
    %39 = arith.mulf %38, %38 : vector<20x256xf32>
    %40 = arith.mulf %30, %39 : vector<20x256xf32>
    %41 = arith.mulf %40, %36 : vector<20x256xf32>
    %42 = arith.mulf %41, %7 : vector<20x256xf32>
    %c0_15 = arith.constant 0 : index
    %c0_16 = arith.constant 0 : index
    %43 = vector.load %arg6[%c0_15, %c0_16] : memref<20x1xf32, #tpu.memory_space<vmem>>, vector<20x1xf32>
    %cst_17 = arith.constant dense<0.000000e+00> : vector<20xf32>
    %44 = vector.multi_reduction <add>, %42, %cst_17 [1] : vector<20x256xf32> to vector<20xf32>
    %45 = vector.shape_cast %44 : vector<20xf32> to vector<20x1xf32>
    %46 = arith.addf %43, %45 : vector<20x1xf32>
    %c0_18 = arith.constant 0 : index
    %c0_19 = arith.constant 0 : index
    %47 = vector.load %arg6[%c0_18, %c0_19] : memref<20x1xf32, #tpu.memory_space<vmem>>, vector<20x1xf32>
    tpu.vector_store %arg6[%c0_18, %c0_19], %46 {strides = array<i32>} : memref<20x1xf32, #tpu.memory_space<vmem>>, vector<20x1xf32>,
    %c0_20 = arith.constant 0 : index
    %c0_21 = arith.constant 0 : index
    %48 = vector.load %arg7[%c0_20, %c0_21] : memref<20x1xf32, #tpu.memory_space<vmem>>, vector<20x1xf32>
    %cst_22 = arith.constant dense<0.000000e+00> : vector<20xf32>
    %49 = vector.multi_reduction <add>, %7, %cst_22 [1] : vector<20x256xf32> to vector<20xf32>
    %50 = vector.shape_cast %49 : vector<20xf32> to vector<20x1xf32>
    %51 = arith.addf %48, %50 : vector<20x1xf32>
    %c0_23 = arith.constant 0 : index
    %c0_24 = arith.constant 0 : index
    %52 = vector.load %arg7[%c0_23, %c0_24] : memref<20x1xf32, #tpu.memory_space<vmem>>, vector<20x1xf32>
    tpu.vector_store %arg7[%c0_23, %c0_24], %51 {strides = array<i32>} : memref<20x1xf32, #tpu.memory_space<vmem>>, vector<20x1xf32>,
    %c0_i32_25 = arith.constant 0 : i32
    %53 = arith.cmpi eq, %arg1, %c0_i32_25 : i32
    %54 = arith.extui %53 : i1 to i32
    %c0_i32_26 = arith.constant 0 : i32
    %55 = arith.cmpi ne, %54, %c0_i32_26 : i32
    scf.if %55 {
      %c0_27 = arith.constant 0 : index
      %c0_28 = arith.constant 0 : index
      %56 = vector.load %arg6[%c0_27, %c0_28] : memref<20x1xf32, #tpu.memory_space<vmem>>, vector<20x1xf32>
      %c0_29 = arith.constant 0 : index
      %c0_30 = arith.constant 0 : index
      %57 = vector.load %arg7[%c0_29, %c0_30] : memref<20x1xf32, #tpu.memory_space<vmem>>, vector<20x1xf32>
      %cst_31 = arith.constant 9.99999993E-9 : f32
      %58 = vector.broadcast %cst_31 : f32 to vector<20x1xf32>
      %59 = arith.addf %57, %58 : vector<20x1xf32>
      %60 = arith.divf %56, %59 : vector<20x1xf32>
      %c0_32 = arith.constant 0 : index
      %c0_33 = arith.constant 0 : index
      %61 = vector.load %arg5[%c0_32, %c0_33] : memref<20x1xf32, #tpu.memory_space<vmem>>, vector<20x1xf32>
      tpu.vector_store %arg5[%c0_32, %c0_33], %60 {strides = array<i32>} : memref<20x1xf32, #tpu.memory_space<vmem>>, vector<20x1xf32>,
    } else {
    }
    return
  }
  func.func @transform_0(%arg0: i32, %arg1: i32) -> (i32, i32) {
    %c0_i32 = arith.constant 0 : i32
    return %arg0, %arg1 : i32, i32
  }
  func.func @transform_1(%arg0: i32, %arg1: i32) -> (i32, i32) {
    %c0_i32 = arith.constant 0 : i32
    return %arg0, %arg1 : i32, i32
  }
  func.func @transform_2(%arg0: i32, %arg1: i32) -> (i32, i32) {
    %c0_i32 = arith.constant 0 : i32
    return %arg0, %arg1 : i32, i32
  }
  func.func @transform_3(%arg0: i32, %arg1: i32) -> (i32, i32) {
    %c0_i32 = arith.constant 0 : i32
    %c0_i32_0 = arith.constant 0 : i32
    return %arg0, %c0_i32 : i32, i32
  }
}

</mosaic_0001>

<bundles_post_ra>
// kernel: tpu_custom_call.1
= control target key start
LH: loop header
LB: loop body
LE: loop exit
PB: predicated region body
PF: predicated region fallthrough
CT: control target
= control target key end

     0   :  { %8 = vsyncpa [#allocation5], 0  ;;  %s823_s0 = inlined_call_operand.hbm [shape: f32[20,256], index: 0, kind: input, shape index: {}]   ;;  %s824_s1 = inlined_call_operand.hbm [shape: s8[20,256], index: 1, kind: input, shape index: {}]   ;;  %s825_s2 = inlined_call_operand.hbm [shape: s8[20,256], index: 2, kind: input, shape index: {}]   ;;  %s826_s3 = inlined_call_operand.vmem [shape: f32[20,1], index: 3, kind: output, shape index: {}]  }
   0x1   :  { %9 = vsyncpa [#allocation7], 0  ;;  %s509_s12 = smov [#allocation6]   ;;  %s439_s16 = scalar_lea.hbm %s824_s1, 192 }
   0x2   :  { %s27_s13 = sshll.u32 %s509_s12, 4  ;;  %p440_p0 = scmp.ne.s32.totalorder %s824_s1, %s439_s16  ;;  %s28_s13 = int_to_ptr.vmem [resolvable:$true] %s27_s13 }
   0x3   :  { %p443_p1 = scmp.lt.u32.totalorder %s439_s16, %s824_s1 }
   0x5   :  { %p445_p2 = pnand %p443_p1, %p440_p0 }
   0x7   :  { %448 = shalt.err (!%p445_p2)
}
   0x8   :  { %s449_s21 = scalar_lea.vmem %s28_s13, 192  ;;  %p454_p4 = scmp.lt.s32.totalorder %s28_s13, %s28_s13 }
   0x9   :  { %p450_p3 = scmp.ne.s32.totalorder %s28_s13, %s449_s21  ;;  %p455_p5 = scmp.lt.s32.totalorder %s449_s21, %s449_s21 }
   0xb   :  { %p456_p6 = por %p455_p5, %p454_p4 }
   0xd   :  { %p457_p7 = pnand %p456_p6, %p450_p3 }
   0xf   :  { %460 = shalt.err (!%p457_p7)
}
  0x10   :  { %s510_s22 = smov 64   ;;  %s511_s23 = smov 4  }
  0x11   :  { %33 = dma.hbm_to_vmem [thread:$0]  %s824_s1, 192, %s28_s13, [#allocation7], %s510_s22, %s510_s22, %s511_s23  }
  0x12   :  { %s512_s26 = smov [#allocation4]   ;;  %s461_s30 = scalar_lea.hbm %s823_s0, 768 }
  0x13   :  { %s15_s27 = sshll.u32 %s512_s26, 4  ;;  %p462_p8 = scmp.ne.s32.totalorder %s823_s0, %s461_s30  ;;  %s16_s27 = int_to_ptr.vmem [resolvable:$true] %s15_s27 }
  0x14   :  { %p465_p9 = scmp.lt.u32.totalorder %s461_s30, %s823_s0 }
  0x16   :  { %p467_p10 = pnand %p465_p9, %p462_p8 }
  0x18   :  { %470 = shalt.err (!%p467_p10)
}
  0x19   :  { %s471_s8 = scalar_lea.vmem %s16_s27, 768  ;;  %p476_p12 = scmp.lt.s32.totalorder %s16_s27, %s16_s27 }
  0x1a   :  { %p472_p11 = scmp.ne.s32.totalorder %s16_s27, %s471_s8  ;;  %p477_p13 = scmp.lt.s32.totalorder %s471_s8, %s471_s8 }
  0x1c   :  { %p478_p0 = por %p477_p13, %p476_p12 }
  0x1e   :  { %p479_p1 = pnand %p478_p0, %p472_p11 }
  0x20   :  { %482 = shalt.err (!%p479_p1)
}
  0x21   :  { %s513_s1 = smov 256   ;;  %s514_s9 = smov 16  }
  0x22   :  { %21 = dma.hbm_to_vmem [thread:$0]  %s823_s0, 768, %s16_s27, [#allocation5], %s513_s1, %s513_s1, %s514_s9  }
  0x23   :  { %s515_s12 = smov [#allocation8]   ;;  %s483_s16 = scalar_lea.hbm %s825_s2, 192 }
  0x24   :  { %s39_s13 = sshll.u32 %s515_s12, 4  ;;  %p484_p2 = scmp.ne.s32.totalorder %s825_s2, %s483_s16  ;;  %s40_s13 = int_to_ptr.vmem [resolvable:$true] %s39_s13 }
  0x25   :  { %p487_p3 = scmp.lt.u32.totalorder %s483_s16, %s825_s2 }
  0x27   :  { %p489_p4 = pnand %p487_p3, %p484_p2 }
  0x29   :  { %492 = shalt.err (!%p489_p4)
}
  0x2a   :  { %s493_s21 = scalar_lea.vmem %s40_s13, 192  ;;  %p498_p6 = scmp.lt.s32.totalorder %s40_s13, %s40_s13 }
  0x2b   :  { %p494_p5 = scmp.ne.s32.totalorder %s40_s13, %s493_s21  ;;  %p499_p7 = scmp.lt.s32.totalorder %s493_s21, %s493_s21 }
  0x2d   :  { %p500_p8 = por %p499_p7, %p498_p6 }
  0x2f   :  { %p501_p9 = pnand %p500_p8, %p494_p5 }
  0x31   :  { %504 = shalt.err (!%p501_p9)
}
  0x32   :  { %45 = dma.hbm_to_vmem [thread:$0]  %s825_s2, 192, %s40_s13, [#allocation7], %s510_s22, %s510_s22, %s511_s23  }
  0x33   :  { %505 = dma.done.wait [#allocation5], 768  }
  0x34   :  { %506 = vsyncadd [#allocation5], 4294966528 }
  0x35   :  { %507 = dma.done.wait [#allocation7], 384  }
  0x36   :  { %508 = vsyncadd [#allocation7], 4294966912  ;;  %vm59_vm0 = vcmask 7168   ;;  %v516_v0 = vmov 0.0   ;;  %v384_v1 = vld [vmem:[#allocation8] sm:$0xff]   ;;  %vm316_vm1 = vcmask 1043456  }
  0x37   :  { %64 = vst.msk [vmem:[#allocation3] sm:$0xff] %vm59_vm0, %v516_v0  ;;  %60 = vst.msk [vmem:[#allocation2] sm:$0xff] %vm59_vm0, %v516_v0  ;;  %v90_v2 = vld [vmem:[#allocation8 + $0x8] sm:$0x5]  ;;  %v385_v3 = vunpack.c.0.s8 %v384_v1  ;;  %v386_v4 = vunpack.c.1.s8 %v384_v1  ;;  %v387_v7 = vunpack.c.2.s8 %v384_v1  ;;  %v388_v8 = vunpack.c.3.s8 %v384_v1  ;;  %v597_v14 = vld [vmem:[#allocation4 + $0x8] sm:$0xff] }
  0x38   :  { %61 = vst.msk [vmem:[#allocation2 + $0x8] sm:$0xff] %vm59_vm0, %v516_v0  ;;  %65 = vst.msk [vmem:[#allocation3 + $0x8] sm:$0xff] %vm59_vm0, %v516_v0  ;;  %v95_v5 = vunpack.c.0.s8 %v90_v2  ;;  %v96_v6 = vunpack.c.1.s8 %v90_v2  ;;  %v587_v9 = vld [vmem:[#allocation4] sm:$0xff]  ;;  %v104_v22 = vand.u32 2147483647, %v597_v14  ;;  %v378_v24 = vld [vmem:[#allocation6] sm:$0xff]  }
  0x39   :  { %v589_v10 = vcvt.s32.f32 %v385_v3  ;;  %v591_v11 = vcvt.s32.f32 %v386_v4  ;;  %v599_v15 = vcvt.s32.f32 %v387_v7  ;;  %v601_v16 = vcvt.s32.f32 %v388_v8  ;;  %v613_v27 = vld [vmem:[#allocation4 + $0x10] sm:$0xff]  ;;  %v615_v28 = vld [vmem:[#allocation4 + $0x18] sm:$0xff]  ;;  %v621_v38 = vld [vmem:[#allocation4 + $0x20] sm:$0xf] }
  0x3a   :  { %v593_v12 = vcvt.s32.f32 %v95_v5  ;;  %v595_v13 = vcvt.s32.f32 %v96_v6  ;;  %v103_v20 = vand.u32 2147483647, %v587_v9  ;;  %v110_v26 = vsub.f32 0.0, %v104_v22  ;;  %v623_v43 = vld [vmem:[#allocation4 + $0x28] sm:$0xf] }
  0x3b   :  { %v333_v17 = vadd.f32 %v591_v11, %v589_v10  ;;  %v336_v23 = vadd.f32 %v601_v16, %v599_v15  ;;  %v379_v30 = vunpack.c.0.s8 %v378_v24  ;;  %v105_v32 = vand.u32 2147483647, %v613_v27  ;;  %v75_v53 = vld [vmem:[#allocation6 + $0x8] sm:$0x5] }
  0x3c   :  { %v339_v18 = vsel %vm316_vm1, %v593_v12, 0.0  ;;  %v340_v19 = vsel %vm316_vm1, %v595_v13, 0.0  ;;  %v109_v25 = vsub.f32 0.0, %v103_v20  ;;  %v117_v31 = vmul.f32 1.442695, %v110_v26 }
  0x3d   :  { %v341_v21 = vadd.f32 %v340_v19, %v339_v18  ;;  %334 = vadd.xlane.f32.xlu0 %v333_v17  ;;  %v106_v33 = vand.u32 2147483647, %v615_v28  ;;  %v380_v34 = vunpack.c.1.s8 %v378_v24  ;;  %v111_v35 = vsub.f32 0.0, %v105_v32 }
  0x3e   :  { %v115_v29 = vmul.f32 1.442695, %v109_v25  ;;  %v619_v37 = vcvt.s32.f32 %v379_v30  ;;  %v381_v39 = vunpack.c.2.s8 %v378_v24  ;;  %v382_v40 = vunpack.c.3.s8 %v378_v24 }
  0x3f   :  { %342 = vadd.xlane.f32.xlu1 %v341_v21  ;;  %v112_v36 = vsub.f32 0.0, %v106_v33  ;;  %v119_v41 = vmul.f32 1.442695, %v111_v35  ;;  %v625_v44 = vcvt.s32.f32 %v380_v34  ;;  %v107_v46 = vand.u32 2147483647, %v621_v38 }
  0x40   :  { %397 = vpow2.f32 %v115_v29  ;;  %v187_v45 = vmul.f32 -0.5, %v619_v37  ;;  %v199_v48 = vmax.f32 %v587_v9, 0.0  ;;  %v108_v49 = vand.u32 2147483647, %v623_v43 }
  0x41   :  { %337 = vadd.xlane.f32.xlu0 %v336_v23  ;;  %399 = vpow2.f32 %v117_v31  ;;  %v121_v42 = vmul.f32 1.442695, %v112_v36  ;;  %v188_v47 = vmul.f32 -0.5, %v625_v44  ;;  %v200_v50 = vmax.f32 %v597_v14, 0.0 }
  0x42   :  { %401 = vpow2.f32 %v119_v41  ;;  %v633_v51 = vcvt.s32.f32 %v381_v39  ;;  %v635_v52 = vcvt.s32.f32 %v382_v40  ;;  %v113_v54 = vsub.f32 0.0, %v107_v46 }
  0x43   :  { %403 = vpow2.f32 %v121_v42  ;;  %v637_v55 = vadd.f32 0.75, %v187_v45  ;;  %v205_v56 = vmul.f32 %v619_v37, %v587_v9  ;;  %v206_v57 = vmul.f32 %v625_v44, %v597_v14 }
  0x44   :  { %v114_v58 = vsub.f32 0.0, %v108_v49  ;;  %v189_v60 = vmul.f32 -0.5, %v633_v51  ;;  %v190_v61 = vmul.f32 -0.5, %v635_v52  ;;  %v201_v62 = vmax.f32 %v613_v27, 0.0 }
  0x45   :  { %v123_v63 = vmul.f32 1.442695, %v113_v54  ;;  %v202_v3 = vmax.f32 %v615_v28, 0.0  ;;  %v207_v4 = vmul.f32 %v633_v51, %v613_v27  ;;  %v80_v5 = vunpack.c.0.s8 %v75_v53 }
  0x46   :  { %v208_v7 = vmul.f32 %v635_v52, %v615_v28  ;;  %v81_v8 = vunpack.c.1.s8 %v75_v53  ;;  %v657_v17 = vadd.f32 0.75, %v188_v47  ;;  %v659_v18 = vsub.f32 %v199_v48, %v205_v56 }
  0x47   :  { %405 = vpow2.f32 %v123_v63  ;;  %v125_v19 = vmul.f32 1.442695, %v114_v58  ;;  %v661_v20 = vsub.f32 %v200_v50, %v206_v57  ;;  %v663_v21 = vadd.f32 0.75, %v189_v60 }
  0x48   :  { %v665_v22 = vadd.f32 0.75, %v190_v61  ;;  %vm139_vm2 = vcmp.ge.f32.partialorder %v587_v9, 0.0  ;;  %v669_v24 = vsub.f32 %v201_v62, %v207_v4  ;;  %v671_v25 = vcvt.s32.f32 %v80_v5 }
  0x49   :  { %vm140_vm3 = vcmp.ge.f32.partialorder %v597_v14, 0.0  ;;  %v675_v30 = vsub.f32 %v202_v3, %v208_v7  ;;  %v677_v31 = vcvt.s32.f32 %v81_v8  ;;  %v203_v41 = vmax.f32 %v621_v38, 0.0 }
  0x4a   :  { %v643_v59 = vpop.eup %397  ;;  %v680_v35 = vmul.f32 -0.5, %v671_v25  ;;  %vm141_vm4 = vcmp.ge.f32.partialorder %v613_v27, 0.0  ;;  %v204_v53 = vmax.f32 %v623_v43, 0.0  ;;  %v692_v54 = vmul.f32 %v671_v25, %v621_v38 }
  0x4b   :  { %v648_v1 = vpop.eup %399  ;;  %v127_v2 = vadd.f32 1.0, %v643_v59  ;;  %v220_v23 = vmul.f32 -0.5, %v643_v59  ;;  %v683_v40 = vmul.f32 -0.5, %v677_v31  ;;  %v223_v45 = vand.u32 2147483647, %v643_v59 }
  0x4c   :  { %v128_v6 = vadd.f32 1.0, %v648_v1  ;;  %v402_v26 = vpop.eup %401  ;;  %v229_v29 = vmul.f32 -0.5, %v648_v1  ;;  %v232_v46 = vand.u32 2147483647, %v648_v1  ;;  %vm142_vm5 = vcmp.ge.f32.partialorder %v615_v28, 0.0 }
  0x4d   :  { %407 = vrcp.f32 %v127_v2  ;;  %v404_v32 = vpop.eup %403  ;;  %v129_v33 = vadd.f32 1.0, %v402_v26  ;;  %v238_v34 = vmul.f32 -0.5, %v402_v26  ;;  %v221_v42 = vadd.f32 1.0, %v220_v23 }
  0x4e   :  { %409 = vrcp.f32 %v128_v6  ;;  %v130_v36 = vadd.f32 1.0, %v404_v32  ;;  %v247_v39 = vmul.f32 -0.5, %v404_v32  ;;  %v230_v47 = vadd.f32 1.0, %v229_v29 }
  0x4f   :  { %411 = vlog2.f32 %v127_v2  ;;  %v239_v48 = vadd.f32 1.0, %v238_v34  ;;  %v241_v49 = vand.u32 2147483647, %v402_v26  ;;  %v250_v57 = vand.u32 2147483647, %v404_v32 }
  0x50   :  { %413 = vlog2.f32 %v128_v6  ;;  %v248_v50 = vadd.f32 1.0, %v247_v39  ;;  %v699_v58 = vmul.f32 %v677_v31, %v623_v43  ;;  %vm62_vm6 = vcmask 3072  }
  0x51   :  { %415 = vpow2.f32 %v125_v19  ;;  %v694_v56 = vpop.eup %405  ;;  %v222_v61 = vmul.f32 %v643_v59, %v221_v42  ;;  %vm702_vm7 = vcmp.lt.f32.partialorder %v223_v45, 0.0004427343  ;;  %vm706_vm8 = vcmp.lt.f32.partialorder %v232_v46, 0.0004427343  ;;  %66 = vst.msk [vmem:[#allocation3 + $0x10] sm:$0xf] %vm62_vm6, %v516_v0 }
  0x52   :  { %417 = vrcp.f32 %v129_v33  ;;  %v131_v2 = vadd.f32 1.0, %v694_v56  ;;  %63 = vst.msk [vmem:[#allocation2 + $0x10] sm:$0xf] %vm62_vm6, %v516_v0  ;;  %v231_v59 = vmul.f32 %v648_v1, %v230_v47  ;;  %v716_v5 = vmul.f32 %v402_v26, %v239_v48 }
  0x53   :  { %419 = vrcp.f32 %v130_v36  ;;  %vm718_vm9 = vcmp.lt.f32.partialorder %v241_v49, 0.0004427343  ;;  %v722_v19 = vmul.f32 %v404_v32, %v248_v50  ;;  %v256_v23 = vmul.f32 -0.5, %v694_v56 }
  0x54   :  { %421 = vlog2.f32 %v129_v33  ;;  %vm727_vm10 = vcmp.lt.f32.partialorder %v250_v57, 0.0004427343  ;;  %v259_v26 = vand.u32 2147483647, %v694_v56  ;;  %vm143_vm11 = vcmp.ge.f32.partialorder %v621_v38, 0.0 }
  0x55   :  { %423 = vlog2.f32 %v130_v36  ;;  %v257_v57 = vadd.f32 1.0, %v256_v23  ;;  %vm144_vm12 = vcmp.ge.f32.partialorder %v623_v43, 0.0 }
  0x56   :  { %425 = vrcp.f32 %v131_v2  ;;  %vm781_vm13 = vcmp.lt.f32.partialorder %v259_v26, 0.0004427343 }
  0x57   :  { %v408_v60 = vpop.eup %407  ;;  %427 = vlog2.f32 %v131_v2 }
  0x58   :  { %v410_v3 = vpop.eup %409  ;;  %v145_v4 = vsub.f32 1.0, %v408_v60 }
  0x59   :  { %v412_v7 = vpop.eup %411  ;;  %v146_v8 = vsub.f32 1.0, %v410_v3 }
  0x5a   :  { %v414_v29 = vpop.eup %413  ;;  %v151_v0 = vsel %vm139_vm2, %v408_v60, %v145_v4  ;;  %v219_v33 = vmul.f32 0.6931472, %v412_v7 }
  0x5b   :  { %v732_v34 = vpop.eup %415  ;;  %v152_v32 = vsel %vm140_vm3, %v410_v3, %v146_v8  ;;  %v157_v36 = vsub.f32 1.0, %v151_v0  ;;  %v169_v39 = vmul.f32 2.0, %v151_v0  ;;  %v228_v42 = vmul.f32 0.6931472, %v414_v29 }
  0x5c   :  { %v158_v45 = vsub.f32 1.0, %v152_v32  ;;  %v170_v46 = vmul.f32 2.0, %v152_v32  ;;  %v225_v9 = vsel %vm702_vm7, %v222_v61, %v219_v33  ;;  %v132_v47 = vadd.f32 1.0, %v732_v34  ;;  %v418_v48 = vpop.eup %417 }
  0x5d   :  { %v163_v49 = vsub.f32 %v157_v36, %v619_v37  ;;  %v175_v50 = vmul.f32 %v169_v39, %v619_v37  ;;  %v234_v14 = vsel %vm706_vm8, %v231_v59, %v228_v42  ;;  %v420_v60 = vpop.eup %419  ;;  %v271_v61 = vadd.f32 %v225_v9, %v659_v18 }
  0x5e   :  { %v164_v2 = vsub.f32 %v158_v45, %v625_v44  ;;  %v176_v3 = vmul.f32 %v170_v46, %v625_v44  ;;  %v147_v62 = vsub.f32 1.0, %v418_v48  ;;  %v422_v4 = vpop.eup %421  ;;  %v272_v8 = vadd.f32 %v234_v14, %v661_v20 }
  0x5f   :  { %v181_v7 = vadd.f32 %v175_v50, %v163_v49  ;;  %v148_v29 = vsub.f32 1.0, %v420_v60  ;;  %429 = vrcp.f32 %v132_v47  ;;  %v424_v0 = vpop.eup %423  ;;  %v237_v59 = vmul.f32 0.6931472, %v422_v4 }
  0x60   :  { %v182_v37 = vadd.f32 %v176_v3, %v164_v2  ;;  %v153_v63 = vsel %vm141_vm4, %v418_v48, %v147_v62  ;;  %431 = vlog2.f32 %v132_v47  ;;  %v426_v42 = vpop.eup %425  ;;  %v246_v9 = vmul.f32 0.6931472, %v424_v0 }
  0x61   :  { %v277_v23 = vsub.f32 1.0, %v181_v7  ;;  %v154_v44 = vsel %vm142_vm5, %v420_v60, %v148_v29  ;;  %v159_v33 = vsub.f32 1.0, %v153_v63  ;;  %v171_v18 = vmul.f32 2.0, %v153_v63  ;;  %v428_v28 = vpop.eup %427 }
  0x62   :  { %v278_v32 = vsub.f32 1.0, %v182_v37  ;;  %v160_v36 = vsub.f32 1.0, %v154_v44  ;;  %v172_v20 = vmul.f32 2.0, %v154_v44  ;;  %v243_v39 = vsel %vm718_vm9, %v716_v5, %v237_v59 }
  0x63   :  { %v283_v27 = vmul.f32 %v277_v23, %v277_v23  ;;  %v165_v45 = vsub.f32 %v159_v33, %v633_v51  ;;  %v177_v46 = vmul.f32 %v171_v18, %v633_v51  ;;  %v258_v50 = vmul.f32 %v694_v56, %v257_v57 }
  0x64   :  { %v284_v47 = vmul.f32 %v278_v32, %v278_v32  ;;  %v166_v48 = vsub.f32 %v160_v36, %v635_v52  ;;  %v178_v49 = vmul.f32 %v172_v20, %v635_v52  ;;  %v252_v5 = vsel %vm727_vm10, %v722_v19, %v246_v9 }
  0x65   :  { %v289_v14 = vmul.f32 %v283_v27, %v637_v55  ;;  %v183_v60 = vadd.f32 %v177_v46, %v165_v45  ;;  %v149_v6 = vsub.f32 1.0, %v426_v42  ;;  %v273_v3 = vadd.f32 %v243_v39, %v669_v24 }
  0x66   :  { %v290_v2 = vmul.f32 %v284_v47, %v657_v17  ;;  %v184_v51 = vadd.f32 %v178_v49, %v166_v48  ;;  %v274_v62 = vadd.f32 %v252_v5, %v675_v30  ;;  %v265_v55 = vmul.f32 -0.5, %v732_v34 }
  0x67   :  { %v295_v4 = vmul.f32 %v289_v14, %v271_v61  ;;  %v279_v7 = vsub.f32 1.0, %v183_v60  ;;  %v155_v52 = vsel %vm143_vm11, %v426_v42, %v149_v6  ;;  %v255_v63 = vmul.f32 0.6931472, %v428_v28 }
  0x68   :  { %v296_v57 = vmul.f32 %v290_v2, %v272_v8  ;;  %v280_v29 = vsub.f32 1.0, %v184_v51  ;;  %v161_v0 = vsub.f32 1.0, %v155_v52  ;;  %v173_v1 = vmul.f32 2.0, %v155_v52 }
  0x69   :  { %v430_v19 = vpop.eup %429  ;;  %v301_v37 = vmul.f32 %v295_v4, %v589_v10  ;;  %v285_v17 = vmul.f32 %v279_v7, %v279_v7  ;;  %v266_v59 = vadd.f32 1.0, %v265_v55  ;;  %v215_v18 = vsub.f32 %v203_v41, %v692_v54  ;;  %v331_v55 = vld [vmem:[#allocation3 + $0x8] sm:$0xff]  ;;  %v309_v10 = vld [vmem:[#allocation2 + $0x10] sm:$0xf] }
  0x6a   :  { %v432_v24 = vpop.eup %431  ;;  %v302_v30 = vmul.f32 %v296_v57, %v591_v11  ;;  %v286_v61 = vmul.f32 %v280_v29, %v280_v29  ;;  %v150_v23 = vsub.f32 1.0, %v430_v19  ;;  %v167_v44 = vsub.f32 %v161_v0, %v671_v25 }
  0x6b   :  { %v291_v33 = vmul.f32 %v285_v17, %v663_v21  ;;  %v179_v8 = vmul.f32 %v173_v1, %v671_v25  ;;  %v268_v21 = vand.u32 2147483647, %v732_v34  ;;  %v261_v41 = vsel %vm781_vm13, %v258_v50, %v255_v63  ;;  %v307_v1 = vld [vmem:[#allocation2] sm:$0xff]  ;;  %v308_v63 = vld [vmem:[#allocation2 + $0x8] sm:$0xff] }
  0x6c   :  { %v310_v32 = vadd.f32 %v302_v30, %v301_v37  ;;  %v292_v11 = vmul.f32 %v286_v61, %v665_v22  ;;  %v156_v36 = vsel %vm144_vm12, %v430_v19, %v150_v23  ;;  %v264_v54 = vmul.f32 0.6931472, %v432_v24 }
  0x6d   :  { %v297_v20 = vmul.f32 %v291_v33, %v273_v3  ;;  %v162_v25 = vsub.f32 1.0, %v156_v36  ;;  %v174_v39 = vmul.f32 2.0, %v156_v36  ;;  %v185_v42 = vadd.f32 %v179_v8, %v167_v44  ;;  %v330_v3 = vld [vmem:[#allocation3] sm:$0xff] }
  0x6e   :  { %311 = vadd.xlane.f32.xlu1 %v310_v32  ;;  %v298_v38 = vmul.f32 %v292_v11, %v274_v62  ;;  %v267_v56 = vmul.f32 %v732_v34, %v266_v59  ;;  %vm269_vm14 = vcmp.lt.f32.partialorder %v268_v21, 0.0004427343  ;;  %v197_v46 = vadd.f32 0.75, %v680_v35 }
  0x6f   :  { %v303_v26 = vmul.f32 %v297_v20, %v599_v15  ;;  %v168_v22 = vsub.f32 %v162_v25, %v677_v31  ;;  %v180_v27 = vmul.f32 %v174_v39, %v677_v31  ;;  %v281_v9 = vsub.f32 1.0, %v185_v42 }
  0x70   :  { %v304_v45 = vmul.f32 %v298_v38, %v601_v16  ;;  %v216_v47 = vsub.f32 %v204_v53, %v699_v58  ;;  %v270_v49 = vsel %vm269_vm14, %v267_v56, %v264_v54  ;;  %v275_v34 = vadd.f32 %v261_v41, %v215_v18 }
  0x71   :  { %v186_v28 = vadd.f32 %v180_v27, %v168_v22  ;;  %v287_v50 = vmul.f32 %v281_v9, %v281_v9  ;;  %v198_v15 = vadd.f32 0.75, %v683_v40  ;;  %v332_v40 = vld [vmem:[#allocation3 + $0x10] sm:$0xf] }
  0x72   :  { %v313_v48 = vadd.f32 %v304_v45, %v303_v26  ;;  %v276_v60 = vadd.f32 %v270_v49, %v216_v47 }
  0x73   :  { %v282_v14 = vsub.f32 1.0, %v186_v28  ;;  %v293_v31 = vmul.f32 %v287_v50, %v197_v46 }
  0x74   :  { %314 = vadd.xlane.f32.xlu0 %v313_v48 }
  0x75   :  { %v288_v5 = vmul.f32 %v282_v14, %v282_v14  ;;  %v299_v16 = vmul.f32 %v293_v31, %v275_v34 }
  0x77   :  { %v294_v6 = vmul.f32 %v288_v5, %v198_v15  ;;  %v305_v35 = vmul.f32 %v299_v16, %v593_v12 }
  0x79   :  { %v300_v2 = vmul.f32 %v294_v6, %v276_v60  ;;  %v317_v43 = vsel %vm316_vm1, %v305_v35, 0.0 }
  0x7b   :  { %v306_v51 = vmul.f32 %v300_v2, %v595_v13 }
  0x7d   :  { %v318_v53 = vsel %vm316_vm1, %v306_v51, 0.0 }
  0x7e   :  { %v319_v58 = vadd.f32 %v318_v53, %v317_v43 }
  0x80   :  { %320 = vadd.xlane.f32.xlu1 %v319_v58 }
  0xca   :  { %v335_v62 = vpop.xlane.xlu0 %334 }
  0xcb   :  { %v344_v4 = vadd.f32 %v335_v62, %v330_v3 }
  0xcc   :  { %v343_v7 = vpop.xlane.xlu1 %342 }
  0xcd   :  { %v346_v52 = vadd.f32 %v343_v7, %v332_v40  ;;  %347 = vst.msk [vmem:[#allocation3] sm:$0xff] %vm59_vm0, %v344_v4 }
  0xce   :  { %v338_v12 = vpop.xlane.xlu0 %337 }
  0xcf   :  { %349 = vst.msk [vmem:[#allocation3 + $0x10] sm:$0xf] %vm62_vm6, %v346_v52  ;;  %v345_v57 = vadd.f32 %v338_v12, %v331_v55 }
  0xd1   :  { %348 = vst.msk [vmem:[#allocation3 + $0x8] sm:$0xff] %vm59_vm0, %v345_v57 }
  0xd4   :  { %v356_v13 = vld [vmem:[#allocation3] sm:$0xff] }
  0xd5   :  { %v359_v29 = vadd.f32 1e-08, %v356_v13 }
  0xd6   :  { %v358_v61 = vld [vmem:[#allocation3 + $0x10] sm:$0xf] }
  0xd7   :  { %433 = vrcp.f32 %v359_v29  ;;  %v361_v33 = vadd.f32 1e-08, %v358_v61 }
  0xd8   :  { %v357_v0 = vld [vmem:[#allocation3 + $0x8] sm:$0xff] }
  0xd9   :  { %v360_v19 = vadd.f32 1e-08, %v357_v0 }
  0xdb   :  { %435 = vrcp.f32 %v360_v19 }
  0xdc   :  { %437 = vrcp.f32 %v361_v33 }
  0xe1   :  { %v434_v30 = vpop.eup %433 }
  0xe5   :  { %v436_v8 = vpop.eup %435 }
  0xe6   :  { %v438_v21 = vpop.eup %437 }
  0xfb   :  { %v312_v37 = vpop.xlane.xlu1 %311 }
  0xfc   :  { %v322_v17 = vadd.f32 %v312_v37, %v307_v1 }
  0xfe   :  { %326 = vst.msk [vmem:[#allocation2] sm:$0xff] %vm59_vm0, %v322_v17 }
 0x101   :  { %v315_v59 = vpop.xlane.xlu0 %314 }
 0x102   :  { %v323_v24 = vadd.f32 %v315_v59, %v308_v63 }
 0x104   :  { %327 = vst.msk [vmem:[#allocation2 + $0x8] sm:$0xff] %vm59_vm0, %v323_v24 }
 0x105   :  { %v353_v23 = vld [vmem:[#allocation2] sm:$0xff] }
 0x106   :  { %v363_v44 = vmul.f32 %v434_v30, %v353_v23 }
 0x108   :  { %368 = vst.msk [vmem:[%s826_s3] sm:$0xff] %vm59_vm0, %v363_v44 }
 0x10b   :  { %v354_v18 = vld [vmem:[#allocation2 + $0x8] sm:$0xff] }
 0x10c   :  { %v365_v32 = vmul.f32 %v436_v8, %v354_v18 }
 0x10d   :  { %v321_v11 = vpop.xlane.xlu1 %320 }
 0x10e   :  { %369 = vst.msk [vmem:[%s826_s3 + $0x8] sm:$0xff] %vm59_vm0, %v365_v32  ;;  %v324_v36 = vadd.f32 %v321_v11, %v309_v10 }
 0x110   :  { %329 = vst.msk [vmem:[#allocation2 + $0x10] sm:$0xf] %vm62_vm6, %v324_v36 }
 0x117   :  { %v355_v20 = vld [vmem:[#allocation2 + $0x10] sm:$0xf] }
 0x118   :  { %v367_v25 = vmul.f32 %v438_v21, %v355_v20 }
 0x11a   :  { %370 = vst.msk [vmem:[%s826_s3 + $0x10] sm:$0xf] %vm62_vm6, %v367_v25 }
 0x11b   :  { %375 = vsyncpa [#allocation5], 1 }
 0x11c   :  { %376 = vsyncpa [#allocation7], 1 }

</bundles_post_ra>
